<compile_context>
chip_gen: v5e
topology: v5e:2x2
jax: 0.10.0
libtpu: 0.0.40
codegen_flags: <defaults>
</compile_context>

<pallas_src>
import functools

import jax
import jax.numpy as jnp
from jax.experimental import pallas as pl
from jax.experimental.pallas import tpu as pltpu

HIDDEN = 128
LANE = 128
SUBLANE = 8


def _round_up(x, m):
    return ((x + m - 1) // m) * m


def qnet_kernel(state_ref, emb_ref, w1_ref, b1_ref, w2_ref, b2_ref, out_ref):
    # state_ref: [TB, 1]  int32  (batch tile of state indices)
    # emb_ref  : [Sp, Kp] bf16   (padded embedding table, resident in VMEM)
    # w1_ref   : [Kp, 128] bf16, b1_ref: [1, 128] f32
    # w2_ref   : [128, Ap] bf16, b2_ref: [1, Ap] f32  (-1e30 in padded action columns)
    # out_ref  : [TB, Ap] bf16
    tb = state_ref.shape[0]
    sp = emb_ref.shape[0]

    # Fused embedding lookup: one-hot(state) @ emb on the MXU.  Only the 4 B/row index
    # stream comes from HBM per tile; the table itself stays resident in VMEM.
    onehot = (jax.lax.broadcasted_iota(jnp.int32, (tb, sp), 1)
              == state_ref[...]).astype(jnp.bfloat16)
    x = jnp.dot(onehot, emb_ref[...], preferred_element_type=jnp.float32)

    # Linear(3S, 128) + ReLU.  bf16 MXU operands, f32 accumulation + f32 epilogue
    # (v5e's VPU/EUP have no bf16 path, so the epilogue stays f32 on purpose).
    h = jnp.dot(x.astype(jnp.bfloat16), w1_ref[...],
                preferred_element_type=jnp.float32) + b1_ref[...]
    h = jnp.maximum(h, 0.0)

    # Linear(128, A).
    logits = jnp.dot(h.astype(jnp.bfloat16), w2_ref[...],
                     preferred_element_type=jnp.float32) + b2_ref[...]

    # Numerically-stable softmax over the (padded) action dim; padded logits are ~-1e30
    # (in f32), so exp() underflows to exactly 0 and they never leak into the sum.
    # Exact division: the kernel is DMA-bound, so the extra EUP/VALU work is free.
    m = jnp.max(logits, axis=-1, keepdims=True)
    e = jnp.exp(logits - m)
    s = jnp.sum(e, axis=-1, keepdims=True)
    out_ref[...] = (e / s).astype(out_ref.dtype)


def prepare_params(params):
    """One-time padding / bf16 casting of the static parameters (hoisted out of the
    per-call path).  Call once and reuse the result across forward calls."""
    emb, w1, b1, w2, b2 = params
    S, E = emb.shape                      # E = 3 * state_size
    A = w2.shape[1]

    Sp = _round_up(S, LANE)               # one-hot contraction dim (lane-aligned)
    Kp = _round_up(E, LANE)               # first-matmul contraction dim
    Ap = _round_up(A, LANE)               # lane-dense output dim

    emb_p = jnp.zeros((Sp, Kp), jnp.bfloat16).at[:S, :E].set(emb.astype(jnp.bfloat16))
    w1_p = jnp.zeros((Kp, HIDDEN), jnp.bfloat16).at[:E, :].set(w1.astype(jnp.bfloat16))
    w2_p = jnp.zeros((HIDDEN, Ap), jnp.bfloat16).at[:, :A].set(w2.astype(jnp.bfloat16))
    b1_p = b1.reshape(1, HIDDEN).astype(jnp.float32)
    # Large negative bias in padded action columns -> zero probability after softmax.
    # (Invariant: logits/bias stay f32 inside the kernel.)
    b2_p = jnp.full((1, Ap), -1e30, jnp.float32).at[0, :A].set(
        b2.reshape(-1).astype(jnp.float32))
    return emb_p, w1_p, b1_p, w2_p, b2_p


@functools.partial(jax.jit, static_argnames=("action_size", "tb"))
def discrete_q_forward(state, prepared, *, action_size, tb=1024):
    """state: int[B] indices in [0, state_size). Returns float32[B, action_size]."""
    emb_p, w1_p, b1_p, w2_p, b2_p = prepared
    Sp, Kp = emb_p.shape
    Ap = w2_p.shape[1]
    B = state.shape[0]

    # Batch tiling: cdiv-based tile size bounds padding (worst case is < one sublane
    # row per tile, not ~2x), and for large batches guarantee >= 2 grid steps so the
    # "parallel" axis can shard across v7x's two TensorCores.
    ntiles = pl.cdiv(B, tb)
    if ntiles == 1 and B >= 512:
        ntiles = 2
    TB = _round_up(pl.cdiv(B, ntiles), SUBLANE)
    Bp = ntiles * TB

    # Only the tiny index vector is padded / streamed (4 B per row).
    state_p = jnp.zeros((Bp, 1), jnp.int32).at[:B, 0].set(state.astype(jnp.int32))

    cost = pl.CostEstimate(
        flops=2 * Bp * (Sp * Kp + Kp * HIDDEN + HIDDEN * Ap),
        transcendentals=Bp * Ap,
        bytes_accessed=(Bp * 4                       # state indices (int32)
                        + Bp * Ap * 2                # bf16 output
                        + Sp * Kp * 2 + Kp * HIDDEN * 2 + HIDDEN * Ap * 2   # bf16 weights
                        + (HIDDEN + Ap) * 4),        # f32 biases
    )

    out = pl.pallas_call(
        qnet_kernel,
        out_shape=jax.ShapeDtypeStruct((Bp, Ap), jnp.bfloat16),
        grid=(ntiles,),
        in_specs=[
            pl.BlockSpec((TB, 1), lambda i: (i, 0)),           # state indices: tiled on batch
            pl.BlockSpec((Sp, Kp), lambda i: (0, 0)),          # emb table: resident
            pl.BlockSpec((Kp, HIDDEN), lambda i: (0, 0)),      # w1: resident
            pl.BlockSpec((1, HIDDEN), lambda i: (0, 0)),       # b1: resident
            pl.BlockSpec((HIDDEN, Ap), lambda i: (0, 0)),      # w2: resident
            pl.BlockSpec((1, Ap), lambda i: (0, 0)),           # b2: resident
        ],
        out_specs=pl.BlockSpec((TB, Ap), lambda i: (i, 0)),    # lane-dense bf16 output
        compiler_params=pltpu.CompilerParams(
            dimension_semantics=("parallel",),
            vmem_limit_bytes=64 * 1024 * 1024),
        cost_estimate=cost,
    )(state_p, emb_p, w1_p, b1_p, w2_p, b2_p)

    # Slice the real rows/columns; return f32 to match the PyTorch module's output dtype.
    return out[:B, :action_size].astype(jnp.float32)


def init_params(key, state_size, action_size):
    """Deterministic synthetic init matching the PyTorch module's parameter shapes."""
    emb_dim = state_size * 3
    hidden = HIDDEN
    k_emb, k_w1, k_b1, k_w2, k_b2 = jax.random.split(key, 5)
    # nn.Embedding default: N(0, 1)
    emb = jax.random.normal(k_emb, (state_size, emb_dim), dtype=jnp.float32)
    # nn.Linear default: U(-1/sqrt(fan_in), 1/sqrt(fan_in)); stored here as [in, out]
    lim1 = 1.0 / jnp.sqrt(emb_dim)
    w1 = jax.random.uniform(k_w1, (emb_dim, hidden), minval=-lim1, maxval=lim1, dtype=jnp.float32)
    b1 = jax.random.uniform(k_b1, (1, hidden), minval=-lim1, maxval=lim1, dtype=jnp.float32)
    lim2 = 1.0 / jnp.sqrt(hidden)
    w2 = jax.random.uniform(k_w2, (hidden, action_size), minval=-lim2, maxval=lim2, dtype=jnp.float32)
    b2 = jax.random.uniform(k_b2, (1, action_size), minval=-lim2, maxval=lim2, dtype=jnp.float32)
    return emb, w1, b1, w2, b2


if __name__ == "__main__":
    state_size = 16
    action_size = 4
    batch = 8

    key = jax.random.PRNGKey(0)
    k_params, k_state = jax.random.split(key)
    params = init_params(k_params, state_size, action_size)
    state = jax.random.randint(k_state, (batch,), 0, state_size, dtype=jnp.int32)

    prepared = prepare_params(params)          # one-time padding / bf16 cast
    out = discrete_q_forward(state, prepared, action_size=action_size)
    out = jax.block_until_ready(out)

    assert out.shape == (batch, action_size)
    # Softmax rows sum to ~1 (exact division; residual error is only bf16 output quant).
    assert bool(jnp.allclose(jnp.sum(out, axis=-1), 1.0, atol=1e-2))

    # Pure-JAX reference using the same bf16-quantized parameters (f32 math), mirroring
    # the kernel's bf16 MXU operands with f32 accumulation.
    emb, w1, b1, w2, b2 = params
    emb_q = emb.astype(jnp.bfloat16).astype(jnp.float32)
    w1_q = w1.astype(jnp.bfloat16).astype(jnp.float32)
    w2_q = w2.astype(jnp.bfloat16).astype(jnp.float32)
    ref_x = emb_q[state]
    ref_h = jnp.maximum(ref_x @ w1_q + b1, 0.0)
    ref_h = ref_h.astype(jnp.bfloat16).astype(jnp.float32)
    ref = jax.nn.softmax(ref_h @ w2_q + b2, axis=-1)
    assert bool(jnp.allclose(out, ref, atol=2e-2))

    print("KERNEL_OK")
</pallas_src>

<mosaic_0001>
module attributes {stable_mosaic.version = 11 : i64} {
  func.func @qnet_kernel(%arg0: i32, %arg1: memref<8x1xi32, #tpu.memory_space<vmem>>, %arg2: memref<128x128xbf16, #tpu.memory_space<vmem>>, %arg3: memref<128x128xbf16, #tpu.memory_space<vmem>>, %arg4: memref<1x128xf32, #tpu.memory_space<vmem>>, %arg5: memref<128x128xbf16, #tpu.memory_space<vmem>>, %arg6: memref<1x128xf32, #tpu.memory_space<vmem>>, %arg7: memref<8x128xbf16, #tpu.memory_space<vmem>>) attributes {dimension_semantics = [#tpu.dimension_semantics<parallel>], iteration_bounds = array<i64: 1>, scalar_prefetch = 0 : i64, scratch_operands = 0 : i64, tpu.core_type = #tpu.core_type<tc>, window_params = [{transform_indices = @transform_0, window_bounds = array<i64: 8, 1>}, {pipeline_mode = #tpu.pipeline_mode<synchronous>, transform_indices = @transform_1, window_bounds = array<i64: 128, 128>}, {pipeline_mode = #tpu.pipeline_mode<synchronous>, transform_indices = @transform_2, window_bounds = array<i64: 128, 128>}, {pipeline_mode = #tpu.pipeline_mode<synchronous>, transform_indices = @transform_3, window_bounds = array<i64: 1, 128>}, {pipeline_mode = #tpu.pipeline_mode<synchronous>, transform_indices = @transform_4, window_bounds = array<i64: 128, 128>}, {pipeline_mode = #tpu.pipeline_mode<synchronous>, transform_indices = @transform_5, window_bounds = array<i64: 1, 128>}, {transform_indices = @transform_6, window_bounds = array<i64: 8, 128>}]} {
    %0 = tpu.iota {dimensions = array<i32: 1>} : vector<8x128xi32>
    %c0 = arith.constant 0 : index
    %c0_0 = arith.constant 0 : index
    %1 = vector.load %arg1[%c0, %c0_0] : memref<8x1xi32, #tpu.memory_space<vmem>>, vector<8x1xi32>
    %2 = vector.broadcast %1 : vector<8x1xi32> to vector<8x128xi32>
    %3 = arith.cmpi eq, %0, %2 : vector<8x128xi32>
    %4 = arith.extui %3 : vector<8x128xi1> to vector<8x128xi32>
    %5 = arith.sitofp %4 : vector<8x128xi32> to vector<8x128xf32>
    %6 = arith.truncf %5 : vector<8x128xf32> to vector<8x128xbf16>
    %c0_1 = arith.constant 0 : index
    %c0_2 = arith.constant 0 : index
    %7 = vector.load %arg2[%c0_1, %c0_2] : memref<128x128xbf16, #tpu.memory_space<vmem>>, vector<128x128xbf16>
    %cst = arith.constant dense<0.000000e+00> : vector<8x128xf32>
    %8 = tpu.matmul %6, %7, %cst {dimension_numbers = #tpu.dot_dimension_numbers<[1], [0], [0], [1], [0, 0, 1, 1], [], []>} : vector<8x128xbf16>, vector<128x128xbf16>, vector<8x128xf32> -> vector<8x128xf32>
    %9 = arith.truncf %8 : vector<8x128xf32> to vector<8x128xbf16>
    %c0_3 = arith.constant 0 : index
    %c0_4 = arith.constant 0 : index
    %10 = vector.load %arg3[%c0_3, %c0_4] : memref<128x128xbf16, #tpu.memory_space<vmem>>, vector<128x128xbf16>
    %cst_5 = arith.constant dense<0.000000e+00> : vector<8x128xf32>
    %11 = tpu.matmul %9, %10, %cst_5 {dimension_numbers = #tpu.dot_dimension_numbers<[1], [0], [0], [1], [0, 0, 1, 1], [], []>} : vector<8x128xbf16>, vector<128x128xbf16>, vector<8x128xf32> -> vector<8x128xf32>
    %c0_6 = arith.constant 0 : index
    %c0_7 = arith.constant 0 : index
    %12 = vector.load %arg4[%c0_6, %c0_7] : memref<1x128xf32, #tpu.memory_space<vmem>>, vector<1x128xf32>
    %13 = vector.broadcast %12 : vector<1x128xf32> to vector<8x128xf32>
    %14 = arith.addf %11, %13 : vector<8x128xf32>
    %cst_8 = arith.constant 0.000000e+00 : f32
    %15 = vector.broadcast %cst_8 : f32 to vector<8x128xf32>
    %16 = arith.maximumf %14, %15 : vector<8x128xf32>
    %17 = arith.truncf %16 : vector<8x128xf32> to vector<8x128xbf16>
    %c0_9 = arith.constant 0 : index
    %c0_10 = arith.constant 0 : index
    %18 = vector.load %arg5[%c0_9, %c0_10] : memref<128x128xbf16, #tpu.memory_space<vmem>>, vector<128x128xbf16>
    %cst_11 = arith.constant dense<0.000000e+00> : vector<8x128xf32>
    %19 = tpu.matmul %17, %18, %cst_11 {dimension_numbers = #tpu.dot_dimension_numbers<[1], [0], [0], [1], [0, 0, 1, 1], [], []>} : vector<8x128xbf16>, vector<128x128xbf16>, vector<8x128xf32> -> vector<8x128xf32>
    %c0_12 = arith.constant 0 : index
    %c0_13 = arith.constant 0 : index
    %20 = vector.load %arg6[%c0_12, %c0_13] : memref<1x128xf32, #tpu.memory_space<vmem>>, vector<1x128xf32>
    %21 = vector.broadcast %20 : vector<1x128xf32> to vector<8x128xf32>
    %22 = arith.addf %19, %21 : vector<8x128xf32>
    %cst_14 = arith.constant dense<0xFF800000> : vector<8xf32>
    %23 = vector.multi_reduction <maximumf>, %22, %cst_14 [1] : vector<8x128xf32> to vector<8xf32>
    %24 = vector.shape_cast %23 : vector<8xf32> to vector<8x1xf32>
    %25 = vector.broadcast %24 : vector<8x1xf32> to vector<8x128xf32>
    %26 = arith.subf %22, %25 : vector<8x128xf32>
    %27 = math.exp %26 : vector<8x128xf32>
    %cst_15 = arith.constant dense<0.000000e+00> : vector<8xf32>
    %28 = vector.multi_reduction <add>, %27, %cst_15 [1] : vector<8x128xf32> to vector<8xf32>
    %29 = vector.shape_cast %28 : vector<8xf32> to vector<8x1xf32>
    %30 = vector.broadcast %29 : vector<8x1xf32> to vector<8x128xf32>
    %31 = arith.divf %27, %30 : vector<8x128xf32>
    %32 = arith.truncf %31 : vector<8x128xf32> to vector<8x128xbf16>
    %c0_16 = arith.constant 0 : index
    %c0_17 = arith.constant 0 : index
    %33 = vector.load %arg7[%c0_16, %c0_17] : memref<8x128xbf16, #tpu.memory_space<vmem>>, vector<8x128xbf16>
    tpu.vector_store %arg7[%c0_16, %c0_17], %32 {strides = array<i32>} : memref<8x128xbf16, #tpu.memory_space<vmem>>, vector<8x128xbf16>,
    return
  }
  func.func @transform_0(%arg0: i32) -> (i32, i32) {
    %c0_i32 = arith.constant 0 : i32
    %c0_i32_0 = arith.constant 0 : i32
    return %arg0, %c0_i32 : i32, i32
  }
  func.func @transform_1(%arg0: i32) -> (i32, i32) {
    %c0_i32 = arith.constant 0 : i32
    %c0_i32_0 = arith.constant 0 : i32
    %c0_i32_1 = arith.constant 0 : i32
    return %c0_i32, %c0_i32_0 : i32, i32
  }
  func.func @transform_2(%arg0: i32) -> (i32, i32) {
    %c0_i32 = arith.constant 0 : i32
    %c0_i32_0 = arith.constant 0 : i32
    %c0_i32_1 = arith.constant 0 : i32
    return %c0_i32, %c0_i32_0 : i32, i32
  }
  func.func @transform_3(%arg0: i32) -> (i32, i32) {
    %c0_i32 = arith.constant 0 : i32
    %c0_i32_0 = arith.constant 0 : i32
    %c0_i32_1 = arith.constant 0 : i32
    return %c0_i32, %c0_i32_0 : i32, i32
  }
  func.func @transform_4(%arg0: i32) -> (i32, i32) {
    %c0_i32 = arith.constant 0 : i32
    %c0_i32_0 = arith.constant 0 : i32
    %c0_i32_1 = arith.constant 0 : i32
    return %c0_i32, %c0_i32_0 : i32, i32
  }
  func.func @transform_5(%arg0: i32) -> (i32, i32) {
    %c0_i32 = arith.constant 0 : i32
    %c0_i32_0 = arith.constant 0 : i32
    %c0_i32_1 = arith.constant 0 : i32
    return %c0_i32, %c0_i32_0 : i32, i32
  }
  func.func @transform_6(%arg0: i32) -> (i32, i32) {
    %c0_i32 = arith.constant 0 : i32
    %c0_i32_0 = arith.constant 0 : i32
    return %arg0, %c0_i32 : i32, i32
  }
}

</mosaic_0001>

<bundles_post_ra>
// kernel: discrete_q_forward.1
= control target key start
LH: loop header
LB: loop body
LE: loop exit
PB: predicated region body
PF: predicated region fallthrough
CT: control target
= control target key end

     0   :  { %11 = vsyncpa [#allocation3], 0  ;;  %s628_s0 = inlined_call_operand.vmem [shape: s32[8,1], index: 0, kind: input, shape index: {}]   ;;  %s629_s1 = inlined_call_operand.hbm [shape: bf16[128,128], index: 1, kind: input, shape index: {}]   ;;  %s630_s2 = inlined_call_operand.hbm [shape: bf16[128,128], index: 2, kind: input, shape index: {}]   ;;  %s631_s3 = inlined_call_operand.vmem [shape: f32[1,128], index: 3, kind: input, shape index: {}]   ;;  %s632_s4 = inlined_call_operand.hbm [shape: bf16[128,128], index: 4, kind: input, shape index: {}]   ;;  %s633_s5 = inlined_call_operand.vmem [shape: f32[1,128], index: 5, kind: input, shape index: {}]   ;;  %s634_s6 = inlined_call_operand.vmem [shape: bf16[8,128], index: 6, kind: output, shape index: {}]  }
   0x1   :  { %12 = vsyncpa [#allocation5], 0  ;;  %s32_s23 = sshll.u32 %s630_s2, 4  ;;  %s565_s24 = smov [#allocation4]   ;;  %s33_s23 = int_to_ptr.hbm [resolvable:$true] %s32_s23 }
   0x2   :  { %s34_s25 = sshll.u32 %s565_s24, 4  ;;  %s19_s28 = sshll.u32 %s629_s1, 4  ;;  %s35_s25 = int_to_ptr.vmem [resolvable:$true] %s34_s25  ;;  %s20_s28 = int_to_ptr.hbm [resolvable:$true] %s19_s28 }
   0x3   :  { %s566_s29 = smov 64   ;;  %s567_s30 = smov 4  }
   0x4   :  { %40 = dma.hbm_to_vmem [thread:$0]  %s33_s23, 1024, %s35_s25, [#allocation5], %s566_s29, %s566_s29, %s567_s30  }
   0x5   :  { %s568_s7 = smov [#allocation2]   ;;  %s47_s11 = sshll.u32 %s632_s4, 4  ;;  %s48_s11 = int_to_ptr.hbm [resolvable:$true] %s47_s11 }
   0x6   :  { %s21_s8 = sshll.u32 %s568_s7, 4  ;;  %s569_s2 = smov [#allocation6]   ;;  %s22_s8 = int_to_ptr.vmem [resolvable:$true] %s21_s8 }
   0x7   :  { %27 = dma.hbm_to_vmem [thread:$0]  %s20_s28, 1024, %s22_s8, [#allocation3], %s566_s29, %s566_s29, %s567_s30  }
   0x8   :  { %s49_s12 = sshll.u32 %s569_s2, 4  ;;  %s50_s12 = int_to_ptr.vmem [resolvable:$true] %s49_s12 }
   0x9   :  { %55 = dma.hbm_to_vmem [thread:$0]  %s48_s11, 1024, %s50_s12, [#allocation5], %s566_s29, %s566_s29, %s567_s30  }
   0xa   :  { %561 = dma.done.wait [#allocation3], 1024  }
   0xb   :  { %562 = vsyncadd [#allocation3], 4294966272 }
   0xc   :  { %563 = dma.done.wait [#allocation5], 2048  }
   0xd   :  { %564 = vsyncadd [#allocation5], 4294965248  ;;  %v570_v0 = vmov 0   ;;  %v72_v1 = vld [vmem:[%s628_s0] sm:$0xff]  ;;  %v458_v2 = vld [vmem:[#allocation2 + $0x38] sm:$0xff]  ;;  %v70_v16 = vlaneseq }
   0xe   :  { %482 = vset.pattern.permute.xlu0 %v570_v0  ;;  %144 = vmatpush.bf16.msra.mxu0 %v458_v2  ;;  %v457_v3 = vld [vmem:[#allocation2 + $0x30] sm:$0xff]  ;;  %v456_v4 = vld [vmem:[#allocation2 + $0x28] sm:$0xff]  ;;  %v455_v5 = vld [vmem:[#allocation2 + $0x20] sm:$0xff]  ;;  %v571_v20 = vmov 1.0|1.0  }
   0xf   :  { %74 = vperm.xlu0 %482, %v72_v1   ;;  %v454_v6 = vld [vmem:[#allocation2 + $0x18] sm:$0xff]  ;;  %v453_v7 = vld [vmem:[#allocation2 + $0x10] sm:$0xff]  ;;  %v452_v8 = vld [vmem:[#allocation2 + $0x8] sm:$0xff]  ;;  %v71_v18 = vand.u32 127, %v70_v16 }
  0x10   :  { %v451_v9 = vld [vmem:[#allocation2] sm:$0xff]  ;;  %v466_v10 = vld [vmem:[#allocation4 + $0x38] sm:$0xff]  ;;  %v465_v11 = vld [vmem:[#allocation4 + $0x30] sm:$0xff] }
  0x11   :  { %226 = vmatpush.bf16.msra.mxu1 %v466_v10  ;;  %v464_v12 = vld [vmem:[#allocation4 + $0x28] sm:$0xff]  ;;  %v463_v13 = vld [vmem:[#allocation4 + $0x20] sm:$0xff]  ;;  %v462_v14 = vld [vmem:[#allocation4 + $0x18] sm:$0xff] }
  0x12   :  { %145 = vmatpush.bf16.msra.mxu0 %v457_v3  ;;  %v461_v15 = vld [vmem:[#allocation4 + $0x10] sm:$0xff]  ;;  %v460_v17 = vld [vmem:[#allocation4 + $0x8] sm:$0xff]  ;;  %v459_v21 = vld [vmem:[#allocation4] sm:$0xff] }
  0x13   :  { %v474_v22 = vld [vmem:[#allocation6 + $0x38] sm:$0xff]  ;;  %v473_v23 = vld [vmem:[#allocation6 + $0x30] sm:$0xff]  ;;  %v472_v24 = vld [vmem:[#allocation6 + $0x28] sm:$0xff] }
  0x14   :  { %309 = vmatpush.bf16.msra.mxu2 %v474_v22  ;;  %v471_v25 = vld [vmem:[#allocation6 + $0x20] sm:$0xff]  ;;  %v470_v26 = vld [vmem:[#allocation6 + $0x18] sm:$0xff]  ;;  %v469_v27 = vld [vmem:[#allocation6 + $0x10] sm:$0xff] }
  0x15   :  { %227 = vmatpush.bf16.msra.mxu1 %v465_v11  ;;  %v468_v31 = vld [vmem:[#allocation6 + $0x8] sm:$0xff]  ;;  %v467_v32 = vld [vmem:[#allocation6] sm:$0xff] }
  0x16   :  { %146 = vmatpush.bf16.msra.mxu0 %v456_v4  ;;  %v483_v33 = vld [vmem:[%s631_s3] ss:$0 sm:$0xff] }
  0x17   :  { %v484_v39 = vld [vmem:[%s633_s5] ss:$0 sm:$0xff] }
  0x18   :  { %310 = vmatpush.bf16.msra.mxu2 %v473_v23 }
  0x19   :  { %228 = vmatpush.bf16.msra.mxu1 %v464_v12 }
  0x1a   :  { %147 = vmatpush.bf16.msra.mxu0 %v455_v5 }
  0x1c   :  { %311 = vmatpush.bf16.msra.mxu2 %v472_v24 }
  0x1d   :  { %229 = vmatpush.bf16.msra.mxu1 %v463_v13 }
  0x1e   :  { %148 = vmatpush.bf16.msra.mxu0 %v454_v6 }
  0x20   :  { %312 = vmatpush.bf16.msra.mxu2 %v471_v25 }
  0x21   :  { %230 = vmatpush.bf16.msra.mxu1 %v462_v14 }
  0x22   :  { %149 = vmatpush.bf16.msra.mxu0 %v453_v7 }
  0x24   :  { %313 = vmatpush.bf16.msra.mxu2 %v470_v26 }
  0x25   :  { %231 = vmatpush.bf16.msra.mxu1 %v461_v15 }
  0x26   :  { %150 = vmatpush.bf16.msra.mxu0 %v452_v8 }
  0x28   :  { %314 = vmatpush.bf16.msra.mxu2 %v469_v27 }
  0x29   :  { %232 = vmatpush.bf16.msra.mxu1 %v460_v17 }
  0x2a   :  { %151 = vmatpush.bf16.msra.mxu0 %v451_v9 }
  0x2c   :  { %315 = vmatpush.bf16.msra.mxu2 %v468_v31 }
  0x2d   :  { %233 = vmatpush.bf16.msra.mxu1 %v459_v21 }
  0x30   :  { %316 = vmatpush.bf16.msra.mxu2 %v467_v32 }
  0x81   :  { %v75_v19 = vpop.permute.xlu0 %74 }
  0x82   :  { %vm76_vm0 = vcmp.eq.s32.totalorder %v71_v18, %v75_v19 }
  0x83   :  { %vm385_vm1 = vmpackc.low %vm76_vm0, %vm76_vm0 }
  0x84   :  { %386 = vmatmul.msk.bf16.vlgmr.msra.gmra.mxu0 %vm385_vm1, %v571_v20 }
 0x101   :  { %v153_v28 = vpop.f32.mrf.mxu0 }
 0x102   :  { %v157_v29 = vpack.c.bf16 %v153_v28, %v153_v28 }
 0x104   :  { %234 = vmatmul.bf16.vlgmr.msra.gmra.mxu1 %v157_v29 }
 0x109   :  { %v155_v30 = vpop.f32.mrf.mxu0 }
 0x181   :  { %v235_v34 = vpop.f32.mrf.mxu1 }
 0x182   :  { %v236_v35 = vadd.f32 %v483_v33, %v235_v34 }
 0x184   :  { %v239_v36 = vmax.f32 %v236_v35, 0.0 }
 0x186   :  { %v240_v37 = vpack.c.bf16 %v239_v36, %v239_v36 }
 0x188   :  { %317 = vmatmul.bf16.vlgmr.msra.gmra.mxu2 %v240_v37 }
 0x189   :  { %v237_v38 = vpop.f32.mrf.mxu1 }
 0x20b   :  { %v318_v40 = vpop.f32.mrf.mxu2 }
 0x20c   :  { %v319_v41 = vadd.f32 %v484_v39, %v318_v40 }
 0x20e   :  { %322 = vmax.xlane.f32.xlu0 %v319_v41 }
 0x213   :  { %v320_v42 = vpop.f32.mrf.mxu2 }
 0x281   :  { %v323_v43 = vpop.xlane.xlu0 %322 }
 0x282   :  { %v324_v44 = vsub.f32 %v319_v41, %v323_v43 }
 0x284   :  { %v325_v45 = vmul.f32 1.442695, %v324_v44 }
 0x286   :  { %485 = vpow2.f32 %v325_v45 }
 0x28c   :  { %v486_v46 = vpop.eup %485 }
 0x28d   :  { %327 = vadd.xlane.f32.xlu1 %v486_v46 }
 0x300   :  { %v328_v47 = vpop.xlane.xlu1 %327 }
 0x301   :  { %487 = vrcp.f32 %v328_v47  ;;  %v340_v51 = vand.u32 2147483648, %v328_v47  ;;  %v338_v53 = vand.u32 2147483647, %v328_v47  ;;  %vm334_vm3 = vweird.f32 %v328_v47 }
 0x303   :  { %v341_v55 = vor.u32 1.1754944e-38, %v340_v51  ;;  %vm339_vm5 = vcmp.eq.f32.partialorder %v338_v53, 8.507059e+37 }
 0x307   :  { %v488_v48 = vpop.eup %487 }
 0x308   :  { %v330_v49 = vmul.f32 %v488_v48, %v328_v47  ;;  %vm335_vm2 = vweird.f32 %v488_v48 }
 0x309   :  { %vm336_vm4 = vmor %vm334_vm3, %vm335_vm2 }
 0x30a   :  { %v331_v50 = vsub.f32 1.0, %v330_v49 }
 0x30c   :  { %v332_v52 = vmul.f32 %v488_v48, %v331_v50 }
 0x30e   :  { %v333_v54 = vadd.f32 %v488_v48, %v332_v52 }
 0x310   :  { %v337_v56 = vsel %vm336_vm4, %v488_v48, %v333_v54 }
 0x311   :  { %v342_v57 = vsel %vm339_vm5, %v341_v55, %v337_v56 }
 0x312   :  { %v343_v58 = vmul.f32 %v486_v46, %v342_v57 }
 0x314   :  { %v344_v59 = vpack.c.bf16 %v343_v58, %v343_v58 }
 0x316   :  { %345 = vst [vmem:[%s634_s6] sm:$0xf] %v344_v59 }
 0x317   :  { %350 = vsyncpa [#allocation3], 1 }
 0x318   :  { %351 = vsyncpa [#allocation5], 1 }

</bundles_post_ra>
